<compile_context>
chip_gen: v7x
topology: tpu7x:2x2x1
jax: 0.10.0
libtpu: 0.0.40
codegen_flags: <defaults>
</compile_context>

<pallas_src>
import jax
import jax.numpy as jnp
from jax.experimental import pallas as pl
from jax.experimental.pallas import tpu as pltpu


def scse_kernel(x_ref, w1t_ref, w2t_ref, ws_ref, o_ref):
    # x_ref : (TB, C, HW)  input block (I/O dtype, possibly bf16)
    # w1t_ref: (C, Cr)     cSE conv1 weight, transposed (f32)
    # w2t_ref: (Cr, C)     cSE conv2 weight, transposed (f32)
    # ws_ref : (1, C)      sSE 1x1 conv weight (f32)
    # o_ref : (TB, C, HW)
    hw = x_ref.shape[-1]
    inv_hw = jnp.float32(1.0 / hw)

    # ---- squeeze / reductions (f32 accumulation) ----
    x = x_ref[...].astype(jnp.float32)                        # (TB, C, HW)
    pooled = jnp.sum(x, axis=-1) * inv_hw                     # (TB, C)  lane reduce
    # sSE logits: channel-weighted per-pixel sum (VPU mul + XLU sublane reduce)
    sse_logit = jnp.sum(x * ws_ref[...][:, :, None],
                        axis=1, keepdims=True)                # (TB, 1, HW)

    # ---- excitation: lane-dense matmuls on the MXU ----
    h = jnp.dot(pooled, w1t_ref[...],
                preferred_element_type=jnp.float32)           # (TB, Cr)
    h = jnp.maximum(h, 0.0)                                   # ReLU
    cgate = jax.nn.sigmoid(jnp.dot(h, w2t_ref[...],
                                   preferred_element_type=jnp.float32))  # (TB, C)
    sgate = jax.nn.sigmoid(sse_logit)                         # (TB, 1, HW)

    # combined gate: x*cSE + x*sSE == x * (cgate + sgate)
    gate = cgate[:, :, None] + sgate                          # (TB, C, HW) f32

    # ---- scale pass: re-read x from VMEM (keeps vreg pressure low) ----
    o_ref[...] = (x_ref[...].astype(jnp.float32) * gate).astype(o_ref.dtype)


def scse_forward(x_nchw, w_cse1, w_cse2, w_sse):
    """SCSE forward: x * cSE(x) + x * sSE(x).

    x_nchw : [B, C, H, W]
    w_cse1 : [Cr, C]   Conv2d(ch, ch//re, 1, bias=False) weight (squeezed)
    w_cse2 : [C, Cr]   Conv2d(ch//re, ch, 1, bias=False) weight (squeezed)
    w_sse  : [1, C]    Conv2d(ch, 1, 1, bias=False) weight (squeezed)
    """
    B, C, H, W = x_nchw.shape
    Cr = w_cse1.shape[0]
    HW = H * W
    x = x_nchw.reshape(B, C, HW)          # contiguous merge -> free bitcast

    # Weights transposed in the wrapper so in-kernel matmuls are lane-dense.
    w1t = w_cse1.T.astype(jnp.float32)    # (C, Cr)
    w2t = w_cse2.T.astype(jnp.float32)    # (Cr, C)
    ws = w_sse.astype(jnp.float32)        # (1, C)

    itemsize = jnp.dtype(x.dtype).itemsize
    per_sample = C * HW * itemsize

    # Pick TB (samples per grid step): largest divisor of B whose block stays
    # within ~8 MiB (double-buffered in+out <= ~32 MiB -> safe on v7x's 64 MiB
    # VMEM). Once blocks are already big (>= 1 MiB) keep >= 2 grid steps so
    # v7x's two TensorCores both get work through the "parallel" axis.
    budget = 8 << 20
    divisors = [d for d in range(1, B + 1)
                if B % d == 0 and d * per_sample <= budget]
    with_two_steps = [d for d in divisors if B // d >= 2]
    if with_two_steps and with_two_steps[-1] * per_sample >= (1 << 20):
        candidates = with_two_steps
    else:
        candidates = divisors
    tb = candidates[-1] if candidates else 1
    # TODO(synk): if a single sample exceeds the VMEM budget, split into a
    # two-pass scheme (gate kernel over pooled values + HW-tiled scale kernel).

    grid = (B // tb,)
    block_bytes = tb * per_sample
    # double-buffered input + output blocks + weights + margin
    vmem_limit = int(min(56 << 20, max(32 << 20, 4 * block_bytes + (4 << 20))))

    cost = pl.CostEstimate(
        flops=int(6 * B * C * HW + 4 * B * C * Cr),
        transcendentals=int(B * (C + HW)),
        bytes_accessed=int(2 * B * C * HW * itemsize),
    )

    out = pl.pallas_call(
        scse_kernel,
        out_shape=jax.ShapeDtypeStruct((B, C, HW), x.dtype),
        grid_spec=pl.GridSpec(
            grid=grid,
            in_specs=[
                pl.BlockSpec((tb, C, HW), lambda b: (b, 0, 0)),
                pl.BlockSpec((C, Cr), lambda b: (0, 0)),
                pl.BlockSpec((Cr, C), lambda b: (0, 0)),
                pl.BlockSpec((1, C), lambda b: (0, 0)),
            ],
            out_specs=pl.BlockSpec((tb, C, HW), lambda b: (b, 0, 0)),
        ),
        compiler_params=pltpu.CompilerParams(
            dimension_semantics=("parallel",),
            vmem_limit_bytes=vmem_limit,
        ),
        cost_estimate=cost,
    )(x, w1t, w2t, ws)
    return out.reshape(B, C, H, W)


def scse_reference(x, w_cse1, w_cse2, w_sse):
    """Pure-JAX reference matching the PyTorch SCSE module."""
    pooled = jnp.mean(x, axis=(2, 3))                              # (B, C)
    h = jnp.maximum(pooled @ w_cse1.T, 0.0)                        # (B, Cr)
    cgate = jax.nn.sigmoid(h @ w_cse2.T)                           # (B, C)
    sgate = jax.nn.sigmoid(jnp.einsum('bchw,oc->bohw', x, w_sse))  # (B,1,H,W)
    return x * cgate[:, :, None, None] + x * sgate


if __name__ == "__main__":
    # layer_scse in the reference Net operates on 64-channel feature maps.
    B, C, H, W = 2, 64, 16, 16
    re_ratio = 2
    Cr = C // re_ratio

    key = jax.random.PRNGKey(0)
    kx, k1, k2, k3 = jax.random.split(key, 4)
    x = jax.random.normal(kx, (B, C, H, W), dtype=jnp.float32)
    w_cse1 = jax.random.normal(k1, (Cr, C), dtype=jnp.float32) * 0.2
    w_cse2 = jax.random.normal(k2, (C, Cr), dtype=jnp.float32) * 0.2
    w_sse = jax.random.normal(k3, (1, C), dtype=jnp.float32) * 0.2

    # f32 path — strict check against the reference.
    out = jax.block_until_ready(scse_forward(x, w_cse1, w_cse2, w_sse))
    ref = scse_reference(x, w_cse1, w_cse2, w_sse)
    assert out.shape == (B, C, H, W)
    assert jnp.allclose(out, ref, atol=1e-5, rtol=1e-5), "f32 mismatch vs reference"

    # bf16 I/O path (halves HBM traffic; gate math stays f32 in-kernel).
    x_bf16 = x.astype(jnp.bfloat16)
    out_bf = jax.block_until_ready(scse_forward(x_bf16, w_cse1, w_cse2, w_sse))
    ref_bf = scse_reference(x_bf16.astype(jnp.float32), w_cse1, w_cse2, w_sse)
    assert out_bf.dtype == jnp.bfloat16
    assert jnp.allclose(out_bf.astype(jnp.float32), ref_bf, atol=2e-2, rtol=2e-2), \
        "bf16 mismatch vs reference"

    print("KERNEL_OK")
</pallas_src>

<mosaic_0001>
module attributes {stable_mosaic.version = 11 : i64} {
  func.func @scse_kernel(%arg0: i32, %arg1: memref<2x64x256xf32, #tpu.memory_space<vmem>>, %arg2: memref<64x32xf32, #tpu.memory_space<vmem>>, %arg3: memref<32x64xf32, #tpu.memory_space<vmem>>, %arg4: memref<1x64xf32, #tpu.memory_space<vmem>>, %arg5: memref<2x64x256xf32, #tpu.memory_space<vmem>>) attributes {dimension_semantics = [#tpu.dimension_semantics<parallel>], iteration_bounds = array<i64: 1>, scalar_prefetch = 0 : i64, scratch_operands = 0 : i64, tpu.core_type = #tpu.core_type<tc>, window_params = [{transform_indices = @transform_0, window_bounds = array<i64: 2, 64, 256>}, {pipeline_mode = #tpu.pipeline_mode<synchronous>, transform_indices = @transform_1, window_bounds = array<i64: 64, 32>}, {pipeline_mode = #tpu.pipeline_mode<synchronous>, transform_indices = @transform_2, window_bounds = array<i64: 32, 64>}, {pipeline_mode = #tpu.pipeline_mode<synchronous>, transform_indices = @transform_3, window_bounds = array<i64: 1, 64>}, {transform_indices = @transform_4, window_bounds = array<i64: 2, 64, 256>}]} {
    %c0 = arith.constant 0 : index
    %c0_0 = arith.constant 0 : index
    %c0_1 = arith.constant 0 : index
    %0 = vector.load %arg1[%c0, %c0_0, %c0_1] : memref<2x64x256xf32, #tpu.memory_space<vmem>>, vector<2x64x256xf32>
    %cst = arith.constant dense<0.000000e+00> : vector<2x64xf32>
    %1 = vector.multi_reduction <add>, %0, %cst [2] : vector<2x64x256xf32> to vector<2x64xf32>
    %cst_2 = arith.constant 3.906250e-03 : f32
    %2 = vector.broadcast %cst_2 : f32 to vector<2x64xf32>
    %3 = arith.mulf %1, %2 : vector<2x64xf32>
    %c0_3 = arith.constant 0 : index
    %c0_4 = arith.constant 0 : index
    %4 = vector.load %arg4[%c0_3, %c0_4] : memref<1x64xf32, #tpu.memory_space<vmem>>, vector<1x64xf32>
    %5 = vector.shape_cast %4 : vector<1x64xf32> to vector<1x64x1xf32>
    %6 = vector.broadcast %5 : vector<1x64x1xf32> to vector<2x64x256xf32>
    %7 = arith.mulf %0, %6 : vector<2x64x256xf32>
    %cst_5 = arith.constant dense<0.000000e+00> : vector<2x256xf32>
    %8 = vector.multi_reduction <add>, %7, %cst_5 [1] : vector<2x64x256xf32> to vector<2x256xf32>
    %9 = vector.shape_cast %8 : vector<2x256xf32> to vector<2x1x256xf32>
    %c0_6 = arith.constant 0 : index
    %c0_7 = arith.constant 0 : index
    %10 = vector.load %arg2[%c0_6, %c0_7] : memref<64x32xf32, #tpu.memory_space<vmem>>, vector<64x32xf32>
    %cst_8 = arith.constant dense<0.000000e+00> : vector<2x32xf32>
    %11 = tpu.matmul %3, %10, %cst_8 {dimension_numbers = #tpu.dot_dimension_numbers<[1], [0], [0], [1], [0, 0, 1, 1], [], []>} : vector<2x64xf32>, vector<64x32xf32>, vector<2x32xf32> -> vector<2x32xf32>
    %cst_9 = arith.constant 0.000000e+00 : f32
    %12 = vector.broadcast %cst_9 : f32 to vector<2x32xf32>
    %13 = arith.maximumf %11, %12 : vector<2x32xf32>
    %c0_10 = arith.constant 0 : index
    %c0_11 = arith.constant 0 : index
    %14 = vector.load %arg3[%c0_10, %c0_11] : memref<32x64xf32, #tpu.memory_space<vmem>>, vector<32x64xf32>
    %cst_12 = arith.constant dense<0.000000e+00> : vector<2x64xf32>
    %15 = tpu.matmul %13, %14, %cst_12 {dimension_numbers = #tpu.dot_dimension_numbers<[1], [0], [0], [1], [0, 0, 1, 1], [], []>} : vector<2x32xf32>, vector<32x64xf32>, vector<2x64xf32> -> vector<2x64xf32>
    %16 = arith.negf %15 : vector<2x64xf32>
    %17 = math.exp %16 : vector<2x64xf32>
    %cst_13 = arith.constant 1.000000e+00 : f32
    %18 = vector.broadcast %cst_13 : f32 to vector<2x64xf32>
    %19 = arith.addf %18, %17 : vector<2x64xf32>
    %20 = arith.divf %18, %19 : vector<2x64xf32>
    %21 = arith.negf %9 : vector<2x1x256xf32>
    %22 = math.exp %21 : vector<2x1x256xf32>
    %cst_14 = arith.constant 1.000000e+00 : f32
    %23 = vector.broadcast %cst_14 : f32 to vector<2x1x256xf32>
    %24 = arith.addf %23, %22 : vector<2x1x256xf32>
    %25 = arith.divf %23, %24 : vector<2x1x256xf32>
    %26 = vector.shape_cast %20 : vector<2x64xf32> to vector<2x64x1xf32>
    %27 = vector.broadcast %26 : vector<2x64x1xf32> to vector<2x64x256xf32>
    %28 = vector.broadcast %25 : vector<2x1x256xf32> to vector<2x64x256xf32>
    %29 = arith.addf %27, %28 : vector<2x64x256xf32>
    %c0_15 = arith.constant 0 : index
    %c0_16 = arith.constant 0 : index
    %c0_17 = arith.constant 0 : index
    %30 = vector.load %arg1[%c0_15, %c0_16, %c0_17] : memref<2x64x256xf32, #tpu.memory_space<vmem>>, vector<2x64x256xf32>
    %31 = arith.mulf %30, %29 : vector<2x64x256xf32>
    %c0_18 = arith.constant 0 : index
    %c0_19 = arith.constant 0 : index
    %c0_20 = arith.constant 0 : index
    %32 = vector.load %arg5[%c0_18, %c0_19, %c0_20] : memref<2x64x256xf32, #tpu.memory_space<vmem>>, vector<2x64x256xf32>
    tpu.vector_store %arg5[%c0_18, %c0_19, %c0_20], %31 {strides = array<i32>} : memref<2x64x256xf32, #tpu.memory_space<vmem>>, vector<2x64x256xf32>,
    return
  }
  func.func @transform_0(%arg0: i32) -> (i32, i32, i32) {
    %c0_i32 = arith.constant 0 : i32
    %c0_i32_0 = arith.constant 0 : i32
    %c0_i32_1 = arith.constant 0 : i32
    return %arg0, %c0_i32, %c0_i32_0 : i32, i32, i32
  }
  func.func @transform_1(%arg0: i32) -> (i32, i32) {
    %c0_i32 = arith.constant 0 : i32
    %c0_i32_0 = arith.constant 0 : i32
    %c0_i32_1 = arith.constant 0 : i32
    return %c0_i32, %c0_i32_0 : i32, i32
  }
  func.func @transform_2(%arg0: i32) -> (i32, i32) {
    %c0_i32 = arith.constant 0 : i32
    %c0_i32_0 = arith.constant 0 : i32
    %c0_i32_1 = arith.constant 0 : i32
    return %c0_i32, %c0_i32_0 : i32, i32
  }
  func.func @transform_3(%arg0: i32) -> (i32, i32) {
    %c0_i32 = arith.constant 0 : i32
    %c0_i32_0 = arith.constant 0 : i32
    %c0_i32_1 = arith.constant 0 : i32
    return %c0_i32, %c0_i32_0 : i32, i32
  }
  func.func @transform_4(%arg0: i32) -> (i32, i32, i32) {
    %c0_i32 = arith.constant 0 : i32
    %c0_i32_0 = arith.constant 0 : i32
    %c0_i32_1 = arith.constant 0 : i32
    return %arg0, %c0_i32, %c0_i32_0 : i32, i32, i32
  }
}

</mosaic_0001>

<bundles_post_ra>
// kernel: tpu_custom_call.1
= control target key start
LH: loop header
LB: loop body
LE: loop exit
PB: predicated region body
PF: predicated region fallthrough
CT: control target
= control target key end

     0   :  { %9 = vsyncpa [#allocation3], 0  ;;  %s1173_s0 = inlined_call_operand.hbm [shape: f32[2,64,256], index: 0, kind: input, shape index: {}]   ;;  %s1174_s1 = inlined_call_operand.vmem [shape: f32[64,32], index: 1, kind: input, shape index: {}]   ;;  %s1175_s2 = inlined_call_operand.vmem [shape: f32[32,64], index: 2, kind: input, shape index: {}]   ;;  %s1176_s3 = inlined_call_operand.vmem [shape: f32[1,64], index: 3, kind: input, shape index: {}]   ;;  %s1177_s4 = inlined_call_operand.hbm [shape: f32[2,64,256], index: 4, kind: output, shape index: {}]  }
   0x1   :  { %10 = vsyncpa [#allocation4], 0  ;;  %s878_s15 = smov [#allocation2]   ;;  %s830_s19 = scalar_lea.hbm %s1173_s0, 4096 }
   0x2   :  { %s16_s16 = sshll.u32 %s878_s15, 4  ;;  %p831_p0 = scmp.ne.s32.totalorder %s1173_s0, %s830_s19  ;;  %s17_s16 = int_to_ptr.vmem [resolvable:$true] %s16_s16 }
   0x3   :  { %p834_p1 = scmp.lt.u32.totalorder %s830_s19, %s1173_s0 }
   0x5   :  { %p836_p2 = pnand %p834_p1, %p831_p0 }
   0x7   :  { %839 = shalt.err (!%p836_p2)
}
   0x8   :  { %s840_s24 = scalar_lea.vmem %s17_s16, 4096  ;;  %p845_p4 = scmp.lt.s32.totalorder %s17_s16, %s17_s16 }
   0x9   :  { %p841_p3 = scmp.ne.s32.totalorder %s17_s16, %s840_s24  ;;  %p846_p5 = scmp.lt.s32.totalorder %s840_s24, %s840_s24 }
   0xb   :  { %p847_p6 = por %p846_p5, %p845_p4 }
   0xd   :  { %p848_p7 = pnand %p847_p6, %p841_p3 }
   0xf   :  { %851 = shalt.err (!%p848_p7)
}
  0x10   :  { %s879_s25 = smov 256   ;;  %s880_s26 = smov 16  }
  0x11   :  { %22 = dma.hbm_to_vmem [thread:$0]  %s1173_s0, 4096, %s17_s16, [#allocation3], %s879_s25, %s879_s25, %s880_s26  }
  0x12   :  { %874 = dma.done.wait [#allocation3], 4096  }
  0x13   :  { %875 = vsyncadd [#allocation3], 4294963200  ;;  %v925_v0 = vld [vmem:[#allocation2 + $0x80] sm:$0xff]  ;;  %v927_v1 = vld [vmem:[#allocation2 + $0x88] sm:$0xff]  ;;  %v881_v51 = vmov 0.0|0.0   ;;  %vm882_vm0 = vmmov 0  }
  0x14   :  { %v929_v2 = vld [vmem:[#allocation2] sm:$0xff]  ;;  %v88_v3 = vadd.f32 %v927_v1, %v925_v0  ;;  %v933_v4 = vld [vmem:[#allocation2 + $0x8] sm:$0xff]  ;;  %v935_v5 = vld [vmem:[#allocation2 + $0x90] sm:$0xff]  ;;  %785 = vmatprep.subr.bf16.mxu0 %v881_v51  ;;  %797 = vmatprep.subr.bf16.mxu1 %v881_v51  ;;  %v883_v61 = vmov 0.0   ;;  %vm283_vm1 = vcmask 130112   ;;  %vm290_vm2 = vcmask 195712  }
  0x15   :  { %v937_v6 = vld [vmem:[#allocation2 + $0x98] sm:$0xff]  ;;  %v64_v7 = vadd.f32 %v933_v4, %v929_v2  ;;  %v941_v8 = vld [vmem:[#allocation2 + $0x10] sm:$0xff]  ;;  %v949_v12 = vld [vmem:[#allocation2 + $0xa0] sm:$0xff]  ;;  %771 = vmatprep.mubr.msk.f32.mxu0 %vm882_vm0, %v883_v61  ;;  %782 = vmatprep.mubr.msk.f32.mxu1 %vm882_vm0, %v883_v61  ;;  %vm297_vm3 = vcmask 261312   ;;  %vm304_vm4 = vcmask 326912   ;;  %vm311_vm5 = vcmask 392512  }
  0x16   :  { %v943_v9 = vld [vmem:[#allocation2 + $0x18] sm:$0xff]  ;;  %89 = vadd.xlane.f32.xlu1 %v88_v3  ;;  %v91_v10 = vadd.f32 %v937_v6, %v935_v5  ;;  %v951_v13 = vld [vmem:[#allocation2 + $0xa8] sm:$0xff]  ;;  %v953_v14 = vld [vmem:[#allocation2 + $0x20] sm:$0xff]  ;;  %vm318_vm6 = vcmask 458112   ;;  %vm325_vm7 = vcmask 523712   ;;  %vm366_vm8 = vcmask 1041409  }
  0x17   :  { %65 = vadd.xlane.f32.xlu0 %v64_v7  ;;  %v67_v11 = vadd.f32 %v943_v9, %v941_v8  ;;  %v955_v15 = vld [vmem:[#allocation2 + $0x28] sm:$0xff]  ;;  %v94_v16 = vadd.f32 %v951_v13, %v949_v12  ;;  %v961_v18 = vld [vmem:[#allocation2 + $0xb0] sm:$0xff]  ;;  %v963_v19 = vld [vmem:[#allocation2 + $0xb8] sm:$0xff]  ;;  %vm368_vm9 = vcmask 523264   ;;  %vm446_vm10 = vcmask 261120  }
  0x18   :  { %v70_v17 = vadd.f32 %v955_v15, %v953_v14  ;;  %v965_v20 = vld [vmem:[#allocation2 + $0x30] sm:$0xff]  ;;  %v967_v21 = vld [vmem:[#allocation2 + $0x38] sm:$0xff]  ;;  %v97_v22 = vadd.f32 %v963_v19, %v961_v18  ;;  %v973_v24 = vld [vmem:[#allocation2 + $0xc0] sm:$0xff] }
  0x19   :  { %v73_v23 = vadd.f32 %v967_v21, %v965_v20  ;;  %v975_v25 = vld [vmem:[#allocation2 + $0xc8] sm:$0xff]  ;;  %v977_v26 = vld [vmem:[#allocation2 + $0x40] sm:$0xff]  ;;  %v985_v30 = vld [vmem:[#allocation2 + $0xd0] sm:$0xff] }
  0x1a   :  { %92 = vadd.xlane.f32.xlu1 %v91_v10  ;;  %1192 = vst [vmem:[#allocation8_spill] sm:$0xff] %v975_v25  ;;  %v979_v27 = vld [vmem:[#allocation2 + $0x48] sm:$0xff]  ;;  %v100_v28 = vadd.f32 %v975_v25, %v973_v24  ;;  %1193 = vst [vmem:[#allocation9_spill] sm:$0xff] %v985_v30  ;;  %v987_v31 = vld [vmem:[#allocation2 + $0xd8] sm:$0xff] }
  0x1b   :  { %68 = vadd.xlane.f32.xlu0 %v67_v11  ;;  %v76_v29 = vadd.f32 %v979_v27, %v977_v26  ;;  %1194 = vst [vmem:[#allocation10_spill] sm:$0xff] %v987_v31  ;;  %v989_v32 = vld [vmem:[#allocation2 + $0x50] sm:$0xff]  ;;  %v991_v33 = vld [vmem:[#allocation2 + $0x58] sm:$0xff]  ;;  %v103_v34 = vadd.f32 %v987_v31, %v985_v30  ;;  %v997_v36 = vld [vmem:[#allocation2 + $0xe0] sm:$0xff] }
  0x1c   :  { %v79_v35 = vadd.f32 %v991_v33, %v989_v32  ;;  %1195 = vst [vmem:[#allocation11_spill] sm:$0xff] %v997_v36  ;;  %v999_v37 = vld [vmem:[#allocation2 + $0xe8] sm:$0xff]  ;;  %v1001_v38 = vld [vmem:[#allocation2 + $0x60] sm:$0xff]  ;;  %v1009_v42 = vld [vmem:[#allocation2 + $0xf0] sm:$0xff] }
  0x1d   :  { %1196 = vst [vmem:[#allocation12_spill] sm:$0xff] %v999_v37  ;;  %v1003_v39 = vld [vmem:[#allocation2 + $0x68] sm:$0xff]  ;;  %v106_v40 = vadd.f32 %v999_v37, %v997_v36  ;;  %1197 = vst [vmem:[#allocation13_spill] sm:$0xff] %v1009_v42  ;;  %v1011_v43 = vld [vmem:[#allocation2 + $0xf8] sm:$0xff] }
  0x1e   :  { %95 = vadd.xlane.f32.xlu1 %v94_v16  ;;  %v82_v41 = vadd.f32 %v1003_v39, %v1001_v38  ;;  %1198 = vst [vmem:[#allocation14_spill] sm:$0xff] %v1011_v43  ;;  %v1013_v44 = vld [vmem:[#allocation2 + $0x70] sm:$0xff]  ;;  %v1015_v45 = vld [vmem:[#allocation2 + $0x78] sm:$0xff]  ;;  %v109_v46 = vadd.f32 %v1011_v43, %v1009_v42  ;;  %v248_v48 = vld [vmem:[%s1174_s1] sm:$0xff] }
  0x1f   :  { %71 = vadd.xlane.f32.xlu0 %v70_v17  ;;  %v85_v47 = vadd.f32 %v1015_v45, %v1013_v44  ;;  %v249_v49 = vld [vmem:[%s1174_s1 + $0x8] sm:$0xff]  ;;  %v250_v52 = vld [vmem:[%s1174_s1 + $0x10] sm:$0xff]  ;;  %v251_v53 = vld [vmem:[%s1174_s1 + $0x18] sm:$0xff]  ;;  %v272_v17 = vlaneseq }
  0x20   :  { %v786_v50 = vpack.c.bf16 %v249_v49, %v248_v48  ;;  %v789_v54 = vpack.c.bf16 %v251_v53, %v250_v52  ;;  %v252_v55 = vld [vmem:[%s1174_s1 + $0x20] sm:$0xff]  ;;  %v253_v56 = vld [vmem:[%s1174_s1 + $0x28] sm:$0xff]  ;;  %v254_v58 = vld [vmem:[%s1174_s1 + $0x30] sm:$0xff] }
  0x21   :  { %v792_v57 = vpack.c.bf16 %v253_v56, %v252_v55  ;;  %v255_v59 = vld [vmem:[%s1174_s1 + $0x38] sm:$0xff]  ;;  %v442_v62 = vld [vmem:[%s1175_s2] sm:$0xff]  ;;  %v443_v63 = vld [vmem:[%s1175_s2 + $0x8] sm:$0xff] }
  0x22   :  { %98 = vadd.xlane.f32.xlu1 %v97_v22  ;;  %787 = vmatpush3.bf16.msra.mxu0 %v786_v50  ;;  %v795_v60 = vpack.c.bf16 %v255_v59, %v254_v58  ;;  %v798_v3 = vpack.c.bf16 %v443_v63, %v442_v62 }
  0x23   :  { %74 = vadd.xlane.f32.xlu0 %v73_v23  ;;  %788 = vmatprep.subr.bf16.mxu0 %v881_v51 }
  0x24   :  { %799 = vmatpush3.bf16.msra.mxu1 %v798_v3 }
  0x25   :  { %800 = vmatprep.subr.bf16.mxu1 %v881_v51 }
  0x26   :  { %101 = vadd.xlane.f32.xlu1 %v100_v28  ;;  %790 = vmatpush3.bf16.msra.mxu0 %v789_v54  ;;  %v273_v28 = vand.u32 127, %v272_v17 }
  0x27   :  { %77 = vadd.xlane.f32.xlu0 %v76_v29  ;;  %791 = vmatprep.subr.bf16.mxu0 %v881_v51 }
  0x28   :  { %v306_v49 = vadd.s32 4294967256, %v273_v28  ;;  %v313_v54 = vadd.s32 4294967248, %v273_v28 }
  0x2a   :  { %104 = vadd.xlane.f32.xlu1 %v103_v34  ;;  %793 = vmatpush3.bf16.msra.mxu0 %v792_v57  ;;  %v1051_v34 = vshrl.u32 %v272_v17, 7 }
  0x2b   :  { %80 = vadd.xlane.f32.xlu0 %v79_v35  ;;  %794 = vmatprep.subr.bf16.mxu0 %v881_v51 }
  0x2c   :  { %v276_v50 = vsub.s32 %v273_v28, %v1051_v34 }
  0x2e   :  { %107 = vadd.xlane.f32.xlu1 %v106_v40  ;;  %796 = vmatpush3.bf16.msra.mxu0 %v795_v60  ;;  %v278_v40 = vadd.s32 4294967288, %v273_v28  ;;  %v309_v60 = vsub.s32 %v306_v49, %v1051_v34 }
  0x2f   :  { %83 = vadd.xlane.f32.xlu0 %v82_v41  ;;  %v285_v41 = vadd.s32 4294967280, %v273_v28 }
  0x30   :  { %v281_v52 = vsub.s32 %v278_v40, %v1051_v34 }
  0x31   :  { %v288_v53 = vsub.s32 %v285_v41, %v1051_v34 }
  0x32   :  { %110 = vadd.xlane.f32.xlu1 %v109_v46  ;;  %v292_v46 = vadd.s32 4294967272, %v273_v28 }
  0x33   :  { %86 = vadd.xlane.f32.xlu0 %v85_v47  ;;  %v299_v47 = vadd.s32 4294967264, %v273_v28 }
  0x34   :  { %v295_v56 = vsub.s32 %v292_v46, %v1051_v34 }
  0x35   :  { %v302_v57 = vsub.s32 %v299_v47, %v1051_v34  ;;  %v320_v47 = vadd.s32 4294967240, %v273_v28 }
  0x37   :  { %v323_v28 = vsub.s32 %v320_v47, %v1051_v34  ;;  %v445_v47 = vld [vmem:[%s1175_s2 + $0x18] sm:$0xff] }
  0xa3   :  { %v90_v7 = vpop.xlane.xlu1 %89 }
  0xa4   :  { %v66_v10 = vpop.xlane.xlu0 %65  ;;  %v120_v62 = vmul.f32 0.00390625, %v90_v7 }
  0xa5   :  { %v112_v40 = vmul.f32 0.00390625, %v66_v10 }
  0xa6   :  { %v330_v31 = vrot.slane %v120_v62, %v276_v50 }
  0xa7   :  { %v93_v11 = vpop.xlane.xlu1 %92  ;;  %v277_v25 = vrot.slane %v112_v40, %v276_v50 }
  0xa8   :  { %v69_v16 = vpop.xlane.xlu0 %68  ;;  %v121_v55 = vmul.f32 0.00390625, %v93_v11  ;;  %v316_v11 = vsub.s32 %v313_v54, %v1051_v34 }
  0xa9   :  { %v113_v58 = vmul.f32 0.00390625, %v69_v16 }
  0xaa   :  { %v334_v46 = vrot.slane %v121_v55, %v281_v52 }
  0xab   :  { %v96_v22 = vpop.xlane.xlu1 %95  ;;  %v282_v16 = vrot.slane %v113_v58, %v281_v52 }
  0xac   :  { %v72_v23 = vpop.xlane.xlu0 %71  ;;  %v122_v59 = vmul.f32 0.00390625, %v96_v22  ;;  %v335_v54 = vsel %vm283_vm1, %v334_v46, %v330_v31  ;;  %v444_v46 = vld [vmem:[%s1175_s2 + $0x10] sm:$0xff]  ;;  %s884_s2 = smov [#allocation5]  }
  0xad   :  { %v114_v63 = vmul.f32 0.00390625, %v72_v23  ;;  %v284_v52 = vsel %vm283_vm1, %v282_v16, %v277_v25  ;;  %v801_v16 = vpack.c.bf16 %v445_v47, %v444_v46 }
  0xae   :  { %v339_v22 = vrot.slane %v122_v59, %v288_v53 }
  0xaf   :  { %v99_v29 = vpop.xlane.xlu1 %98  ;;  %v289_v7 = vrot.slane %v114_v63, %v288_v53  ;;  %802 = vmatpush3.bf16.msra.mxu1 %v801_v16 }
  0xb0   :  { %v75_v35 = vpop.xlane.xlu0 %74  ;;  %v123_v3 = vmul.f32 0.00390625, %v99_v29  ;;  %v340_v58 = vsel %vm290_vm2, %v339_v22, %v335_v54  ;;  %v733_v22 = vld [vmem:[%s1176_s3] ss:$0 sm:$0xff]  ;;  %s721_s3 = sshll.u32 %s884_s2, 4  ;;  %s722_s3 = int_to_ptr.vmem [resolvable:$true] %s721_s3 }
  0xb1   :  { %v115_v41 = vmul.f32 0.00390625, %v75_v35  ;;  %v291_v62 = vsel %vm290_vm2, %v289_v7, %v284_v52  ;;  %138 = vbcast.lane.b32.xlu1 %v733_v22, 264  ;;  %134 = vbcast.lane.b32.xlu0 %v733_v22, 256  ;;  %v587_v52 = vsub.s32 1, %v1051_v34  ;;  %s852_s0 = scalar_lea.vmem %s722_s3, 4096  ;;  %p857_p9 = scmp.lt.s32.totalorder %s722_s3, %s722_s3 }
  0xb2   :  { %v344_v23 = vrot.slane %v123_v3, %v295_v56  ;;  %p853_p8 = scmp.ne.s32.totalorder %s722_s3, %s852_s0  ;;  %p858_p10 = scmp.lt.s32.totalorder %s852_s0, %s852_s0 }
  0xb3   :  { %v102_v48 = vpop.xlane.xlu1 %101  ;;  %v296_v10 = vrot.slane %v115_v41, %v295_v56 }
  0xb4   :  { %v78_v51 = vpop.xlane.xlu0 %77  ;;  %v124_v43 = vmul.f32 0.00390625, %v102_v48  ;;  %v345_v50 = vsel %vm297_vm3, %v344_v23, %v340_v58  ;;  %p859_p11 = por %p858_p10, %p857_p9 }
  0xb5   :  { %v116_v42 = vmul.f32 0.00390625, %v78_v51  ;;  %v298_v31 = vsel %vm297_vm3, %v296_v10, %v291_v62  ;;  %142 = vbcast.lane.b32.xlu1 %v733_v22, 272  ;;  %150 = vbcast.lane.b32.xlu0 %v733_v22, 288 }
  0xb6   :  { %v349_v35 = vrot.slane %v124_v43, %v302_v57  ;;  %p860_p12 = pnand %p859_p11, %p853_p8 }
  0xb7   :  { %v105_v61 = vpop.xlane.xlu1 %104  ;;  %v303_v55 = vrot.slane %v116_v42, %v302_v57 }
  0xb8   :  { %v81_v17 = vpop.xlane.xlu0 %80  ;;  %v125_v37 = vmul.f32 0.00390625, %v105_v61 }
  0xb9   :  { %v117_v36 = vmul.f32 0.00390625, %v81_v17  ;;  %v305_v25 = vsel %vm304_vm4, %v303_v55, %v298_v31  ;;  %146 = vbcast.lane.b32.xlu1 %v733_v22, 280  ;;  %158 = vbcast.lane.b32.xlu0 %v733_v22, 304  ;;  %v552_v55 = vsub.s32 0, %v1051_v34 }
  0xba   :  { %v354_v51 = vrot.slane %v125_v37, %v309_v60  ;;  %v350_v37 = vsel %vm304_vm4, %v349_v35, %v345_v50 }
  0xbb   :  { %v108_v49 = vpop.xlane.xlu1 %107  ;;  %v310_v59 = vrot.slane %v117_v36, %v309_v60 }
  0xbc   :  { %v126_v29 = vmul.f32 0.00390625, %v108_v49  ;;  %v84_v30 = vpop.xlane.xlu0 %83  ;;  %v355_v57 = vsel %vm311_vm5, %v354_v51, %v350_v37 }
  0xbd   :  { %v118_v48 = vmul.f32 0.00390625, %v84_v30  ;;  %v312_v60 = vsel %vm311_vm5, %v310_v59, %v305_v25  ;;  %154 = vbcast.lane.b32.xlu1 %v733_v22, 296 }
  0xbe   :  { %v359_v61 = vrot.slane %v126_v29, %v316_v11 }
  0xbf   :  { %v111_v53 = vpop.xlane.xlu1 %110  ;;  %v317_v56 = vrot.slane %v118_v48, %v316_v11 }
  0xc0   :  { %v127_v43 = vmul.f32 0.00390625, %v111_v53  ;;  %v87_v30 = vpop.xlane.xlu0 %86  ;;  %v360_v63 = vsel %vm318_vm6, %v359_v61, %v355_v57 }
  0xc1   :  { %v119_v42 = vmul.f32 0.00390625, %v87_v30  ;;  %v319_v17 = vsel %vm318_vm6, %v317_v56, %v312_v60  ;;  %162 = vbcast.lane.b32.xlu1 %v733_v22, 312 }
  0xc2   :  { %v364_v36 = vrot.slane %v127_v43, %v323_v28 }
  0xc3   :  { %v324_v3 = vrot.slane %v119_v42, %v323_v28 }
  0xc4   :  { %v365_v40 = vsel %vm325_vm7, %v364_v36, %v360_v63 }
  0xc5   :  { %v326_v41 = vsel %vm325_vm7, %v324_v3, %v319_v17 }
  0xc6   :  { %v367_v11 = vsel %vm366_vm8, %v365_v40, %v326_v41 }
  0xc7   :  { %772 = vmatmul.mubr.msk.f32.vlgmr.msra.gmra.mrb[0].mxu0 %vm368_vm9, %v367_v11 }
 0x123   :  { %v139_v59 = vpop.permute.xlu1 %138  ;;  %v135_v61 = vpop.permute.xlu0 %134 }
 0x124   :  { %v166_v62 = vmul.f32 %v139_v59, %v941_v8  ;;  %v164_v50 = vmul.f32 %v135_v61, %v929_v2  ;;  %v167_v56 = vmul.f32 %v139_v59, %v943_v9  ;;  %v165_v34 = vmul.f32 %v135_v61, %v933_v4 }
 0x125   :  { %v182_v46 = vmul.f32 %v139_v59, %v935_v5  ;;  %v180_v47 = vmul.f32 %v135_v61, %v925_v0  ;;  %v183_v16 = vmul.f32 %v139_v59, %v937_v6  ;;  %v181_v22 = vmul.f32 %v135_v61, %v927_v1 }
 0x126   :  { %v196_v30 = vadd.f32 %v166_v62, %v164_v50  ;;  %v209_v37 = vadd.f32 %v167_v56, %v165_v34 }
 0x127   :  { %v143_v53 = vpop.permute.xlu1 %142  ;;  %v151_v63 = vpop.permute.xlu0 %150 }
 0x128   :  { %v168_v43 = vmul.f32 %v143_v53, %v953_v14  ;;  %v169_v31 = vmul.f32 %v143_v53, %v955_v15  ;;  %v172_v17 = vmul.f32 %v151_v63, %v977_v26  ;;  %v173_v41 = vmul.f32 %v151_v63, %v979_v27 }
 0x12a   :  { %v197_v57 = vadd.f32 %v196_v30, %v168_v43  ;;  %v210_v60 = vadd.f32 %v209_v37, %v169_v31  ;;  %v188_v37 = vmul.f32 %v151_v63, %v973_v24 }
 0x12b   :  { %v147_v42 = vpop.permute.xlu1 %146 }
 0x12c   :  { %v170_v25 = vmul.f32 %v147_v42, %v965_v20  ;;  %v171_v36 = vmul.f32 %v147_v42, %v967_v21  ;;  %v186_v61 = vmul.f32 %v147_v42, %v961_v18  ;;  %v187_v50 = vmul.f32 %v147_v42, %v963_v19  ;;  %v1201_v42 = vld [vmem:[#allocation10_spill] sm:$0xff] }
 0x12e   :  { %v198_v3 = vadd.f32 %v197_v57, %v170_v25  ;;  %v211_v40 = vadd.f32 %v210_v60, %v171_v36  ;;  %v1199_v57 = vld [vmem:[#allocation8_spill] sm:$0xff] }
 0x12f   :  { %v155_v11 = vpop.permute.xlu1 %154  ;;  %v189_v36 = vmul.f32 %v151_v63, %v1199_v57  ;;  %v1204_v63 = vld [vmem:[#allocation13_spill] sm:$0xff] }
 0x133   :  { %v163_v59 = vpop.permute.xlu1 %162 }
 0x134   :  { %v178_v43 = vmul.f32 %v163_v59, %v1013_v44 }
 0x19a   :  { %v437_v49 = vpop.f32.mrb[0].mxu0 }
 0x19b   :  { %v441_v7 = vmax.f32 %v437_v49, 0.0  ;;  %v773_v23 = vpop.f32.mrb[1].mxu0  ;;  %v199_v49 = vadd.f32 %v198_v3, %v172_v17 }
 0x19c   :  { %v212_v23 = vadd.f32 %v211_v40, %v173_v41  ;;  %v1200_v40 = vld [vmem:[#allocation9_spill] sm:$0xff] }
 0x19d   :  { %783 = vmatmul.mubr.msk.f32.vlgmr.msra.gmra.mrb[0].mxu1 %vm446_vm10, %v441_v7  ;;  %v174_v7 = vmul.f32 %v155_v11, %v989_v32  ;;  %v190_v41 = vmul.f32 %v155_v11, %v1200_v40 }
 0x270   :  { %v516_v29 = vpop.f32.mrb[0].mxu1 }
 0x271   :  { %v736_v10 = vmul.f32 -1.442695, %v516_v29  ;;  %v784_v35 = vpop.f32.mrb[1].mxu1  ;;  %v175_v29 = vmul.f32 %v155_v11, %v991_v33 }
 0x272   :  { %v184_v35 = vmul.f32 %v143_v53, %v949_v12 }
 0x273   :  { %810 = vpow2.f32 %v736_v10  ;;  %v159_v10 = vpop.permute.xlu0 %158 }
 0x27d   :  { %v811_v48 = vpop.eup %810 }
 0x27e   :  { %v523_v54 = vadd.f32 1.0, %v811_v48  ;;  %v222_v48 = vadd.f32 %v182_v46, %v180_v47  ;;  %v191_v47 = vmul.f32 %v155_v11, %v1201_v42 }
 0x280   :  { %812 = vrcp.f32 %v523_v54  ;;  %v185_v54 = vmul.f32 %v143_v53, %v951_v13  ;;  %v223_v62 = vadd.f32 %v222_v48, %v184_v35  ;;  %v179_v53 = vmul.f32 %v163_v59, %v1015_v45  ;;  %v1203_v35 = vld [vmem:[#allocation12_spill] sm:$0xff] }
 0x281   :  { %v193_v48 = vmul.f32 %v159_v10, %v1203_v35 }
 0x282   :  { %v224_v31 = vadd.f32 %v223_v62, %v186_v61 }
 0x284   :  { %v225_v17 = vadd.f32 %v224_v31, %v188_v37 }
 0x28a   :  { %v813_v51 = vpop.eup %812 }
 0x28b   :  { %v553_v28 = vrot.slane %v813_v51, %v552_v55  ;;  %v588_v58 = vrot.slane %v813_v51, %v587_v52  ;;  %v235_v55 = vadd.f32 %v183_v16, %v181_v22  ;;  %v200_v51 = vadd.f32 %v199_v49, %v174_v7  ;;  %v1202_v7 = vld [vmem:[#allocation11_spill] sm:$0xff] }
 0x28c   :  { %v213_v52 = vadd.f32 %v212_v23, %v175_v29  ;;  %v226_v49 = vadd.f32 %v225_v17, %v190_v41  ;;  %v192_v23 = vmul.f32 %v159_v10, %v1202_v7 }
 0x28d   :  { %559 = vbcast.lane.b32.xlu1 %v553_v28, 264  ;;  %555 = vbcast.lane.b32.xlu0 %v553_v28, 256  ;;  %v236_v56 = vadd.f32 %v235_v55, %v185_v54 }
 0x28f   :  { %v237_v25 = vadd.f32 %v236_v56, %v187_v50 }
 0x291   :  { %567 = vbcast.lane.b32.xlu1 %v553_v28, 280  ;;  %563 = vbcast.lane.b32.xlu0 %v553_v28, 272  ;;  %v238_v46 = vadd.f32 %v237_v25, %v189_v36 }
 0x293   :  { %v239_v29 = vadd.f32 %v238_v46, %v191_v47 }
 0x295   :  { %575 = vbcast.lane.b32.xlu1 %v553_v28, 296  ;;  %571 = vbcast.lane.b32.xlu0 %v553_v28, 288 }
 0x299   :  { %583 = vbcast.lane.b32.xlu1 %v553_v28, 312  ;;  %579 = vbcast.lane.b32.xlu0 %v553_v28, 304  ;;  %v176_v28 = vmul.f32 %v159_v10, %v1001_v38 }
 0x29b   :  { %v201_v34 = vadd.f32 %v200_v51, %v176_v28  ;;  %v227_v51 = vadd.f32 %v226_v49, %v192_v23  ;;  %v194_v28 = vmul.f32 %v163_v59, %v1204_v63 }
 0x29d   :  { %594 = vbcast.lane.b32.xlu1 %v588_v58, 264  ;;  %590 = vbcast.lane.b32.xlu0 %v588_v58, 256  ;;  %v202_v60 = vadd.f32 %v201_v34, %v178_v43  ;;  %v228_v56 = vadd.f32 %v227_v51, %v194_v28 }
 0x29f   :  { %v203_v16 = vrot.slane %v202_v60, 4 }
 0x2a1   :  { %602 = vbcast.lane.b32.xlu1 %v588_v58, 280  ;;  %598 = vbcast.lane.b32.xlu0 %v588_v58, 272  ;;  %v204_v54 = vadd.f32 %v203_v16, %v202_v60 }
 0x2a3   :  { %v205_v62 = vrot.slane %v204_v54, 2 }
 0x2a5   :  { %610 = vbcast.lane.b32.xlu1 %v588_v58, 296  ;;  %606 = vbcast.lane.b32.xlu0 %v588_v58, 288  ;;  %v206_v11 = vadd.f32 %v205_v62, %v204_v54 }
 0x2a9   :  { %618 = vbcast.lane.b32.xlu1 %v588_v58, 312  ;;  %614 = vbcast.lane.b32.xlu0 %v588_v58, 304  ;;  %v177_v58 = vmul.f32 %v159_v10, %v1003_v39 }
 0x2ab   :  { %v214_v30 = vadd.f32 %v213_v52, %v177_v58  ;;  %v240_v52 = vadd.f32 %v239_v29, %v193_v48  ;;  %v1205_v58 = vld [vmem:[#allocation14_spill] sm:$0xff] }
 0x2ac   :  { %v195_v61 = vmul.f32 %v163_v59, %v1205_v58 }
 0x2ad   :  { %v215_v3 = vadd.f32 %v214_v30, %v179_v53  ;;  %v229_v30 = vrot.slane %v228_v56, 4  ;;  %v207_v53 = vrot.slane %v206_v11, 1 }
 0x2ae   :  { %v241_v34 = vadd.f32 %v240_v52, %v195_v61 }
 0x2af   :  { %v216_v22 = vrot.slane %v215_v3, 4  ;;  %v230_v25 = vadd.f32 %v229_v30, %v228_v56  ;;  %v208_v10 = vadd.f32 %v207_v53, %v206_v11 }
 0x2b0   :  { %v242_v31 = vrot.slane %v241_v34, 4 }
 0x2b1   :  { %v217_v55 = vadd.f32 %v216_v22, %v215_v3  ;;  %v231_v3 = vrot.slane %v230_v25, 2  ;;  %v737_v41 = vmul.f32 -1.442695, %v208_v10 }
 0x2b2   :  { %v243_v36 = vadd.f32 %v242_v31, %v241_v34 }
 0x2b3   :  { %v218_v50 = vrot.slane %v217_v55, 2  ;;  %v232_v47 = vadd.f32 %v231_v3, %v230_v25  ;;  %814 = vpow2.f32 %v737_v41 }
 0x2b4   :  { %v244_v17 = vrot.slane %v243_v36, 2 }
 0x2b5   :  { %v219_v43 = vadd.f32 %v218_v50, %v217_v55  ;;  %v233_v16 = vrot.slane %v232_v47, 1 }
 0x2b6   :  { %v245_v59 = vadd.f32 %v244_v17, %v243_v36 }
 0x2b7   :  { %v220_v37 = vrot.slane %v219_v43, 1  ;;  %v234_v49 = vadd.f32 %v233_v16, %v232_v47 }
 0x2b8   :  { %v246_v22 = vrot.slane %v245_v59, 1 }
 0x2b9   :  { %v221_v60 = vadd.f32 %v220_v37, %v219_v43  ;;  %v739_v54 = vmul.f32 -1.442695, %v234_v49 }
 0x2ba   :  { %v247_v23 = vadd.f32 %v246_v22, %v245_v59 }
 0x2bb   :  { %v738_v46 = vmul.f32 -1.442695, %v221_v60 }
 0x2bc   :  { %v740_v55 = vmul.f32 -1.442695, %v247_v23 }
 0x2bd   :  { %816 = vpow2.f32 %v738_v46  ;;  %v815_v29 = vpop.eup %814 }
 0x2be   :  { %v538_v51 = vadd.f32 1.0, %v815_v29  ;;  %818 = vpow2.f32 %v739_v54 }
 0x2bf   :  { %820 = vpow2.f32 %v740_v55 }
 0x2c0   :  { %822 = vrcp.f32 %v538_v51 }
 0x2c7   :  { %v817_v48 = vpop.eup %816 }
 0x2c8   :  { %v539_v28 = vadd.f32 1.0, %v817_v48  ;;  %v819_v52 = vpop.eup %818 }
 0x2c9   :  { %v821_v61 = vpop.eup %820  ;;  %v540_v56 = vadd.f32 1.0, %v819_v52 }
 0x2ca   :  { %824 = vrcp.f32 %v539_v28  ;;  %v823_v62 = vpop.eup %822  ;;  %v541_v11 = vadd.f32 1.0, %v821_v61 }
 0x2cb   :  { %826 = vrcp.f32 %v540_v56 }
 0x2cc   :  { %828 = vrcp.f32 %v541_v11 }
 0x2d4   :  { %v825_v50 = vpop.eup %824 }
 0x2d5   :  { %v1128_v55 = vpop.eup %826 }
 0x2d6   :  { %v829_v11 = vpop.eup %828 }
 0x2ff   :  { %v560_v34 = vpop.permute.xlu1 %559  ;;  %v556_v43 = vpop.permute.xlu0 %555 }
 0x300   :  { %v622_v30 = vadd.f32 %v823_v62, %v560_v34  ;;  %v623_v53 = vadd.f32 %v825_v50, %v560_v34  ;;  %v620_v31 = vadd.f32 %v823_v62, %v556_v43  ;;  %v621_v37 = vadd.f32 %v825_v50, %v556_v43 }
 0x302   :  { %v654_v25 = vmul.f32 %v622_v30, %v941_v8  ;;  %v655_v10 = vmul.f32 %v623_v53, %v943_v9  ;;  %v652_v36 = vmul.f32 %v620_v31, %v929_v2  ;;  %v653_v60 = vmul.f32 %v621_v37, %v933_v4 }
 0x303   :  { %v568_v3 = vpop.permute.xlu1 %567  ;;  %v564_v17 = vpop.permute.xlu0 %563 }
 0x304   :  { %686 = vst [vmem:[#allocation5 + $0x10] sm:$0xff] %v654_v25  ;;  %687 = vst [vmem:[#allocation5 + $0x18] sm:$0xff] %v655_v10  ;;  %v626_v41 = vadd.f32 %v823_v62, %v568_v3  ;;  %v627_v46 = vadd.f32 %v825_v50, %v568_v3  ;;  %v624_v47 = vadd.f32 %v823_v62, %v564_v17 }
 0x305   :  { %684 = vst [vmem:[#allocation5] sm:$0xff] %v652_v36  ;;  %685 = vst [vmem:[#allocation5 + $0x8] sm:$0xff] %v653_v60  ;;  %v625_v59 = vadd.f32 %v825_v50, %v564_v17 }
 0x306   :  { %v658_v16 = vmul.f32 %v626_v41, %v965_v20  ;;  %v659_v8 = vmul.f32 %v627_v46, %v967_v21  ;;  %v656_v9 = vmul.f32 %v624_v47, %v953_v14 }
 0x307   :  { %v657_v2 = vmul.f32 %v625_v59, %v955_v15  ;;  %v576_v4 = vpop.permute.xlu1 %575  ;;  %v572_v22 = vpop.permute.xlu0 %571 }
 0x308   :  { %690 = vst [vmem:[#allocation5 + $0x30] sm:$0xff] %v658_v16  ;;  %691 = vst [vmem:[#allocation5 + $0x38] sm:$0xff] %v659_v8  ;;  %v630_v49 = vadd.f32 %v823_v62, %v576_v4  ;;  %v631_v23 = vadd.f32 %v825_v50, %v576_v4  ;;  %v628_v29 = vadd.f32 %v823_v62, %v572_v22 }
 0x309   :  { %688 = vst [vmem:[#allocation5 + $0x20] sm:$0xff] %v656_v9  ;;  %689 = vst [vmem:[#allocation5 + $0x28] sm:$0xff] %v657_v2  ;;  %v629_v48 = vadd.f32 %v825_v50, %v572_v22 }
 0x30a   :  { %v662_v54 = vmul.f32 %v630_v49, %v989_v32  ;;  %v663_v20 = vmul.f32 %v631_v23, %v991_v33  ;;  %v660_v21 = vmul.f32 %v628_v29, %v977_v26 }
 0x30b   :  { %v661_v14 = vmul.f32 %v629_v48, %v979_v27  ;;  %v584_v15 = vpop.permute.xlu1 %583  ;;  %v580_v51 = vpop.permute.xlu0 %579 }
 0x30c   :  { %694 = vst [vmem:[#allocation5 + $0x50] sm:$0xff] %v662_v54  ;;  %695 = vst [vmem:[#allocation5 + $0x58] sm:$0xff] %v663_v20  ;;  %v634_v28 = vadd.f32 %v823_v62, %v584_v15  ;;  %v635_v52 = vadd.f32 %v825_v50, %v584_v15  ;;  %v632_v61 = vadd.f32 %v823_v62, %v580_v51 }
 0x30d   :  { %692 = vst [vmem:[#allocation5 + $0x40] sm:$0xff] %v660_v21  ;;  %693 = vst [vmem:[#allocation5 + $0x48] sm:$0xff] %v661_v14  ;;  %v633_v56 = vadd.f32 %v825_v50, %v580_v51 }
 0x30e   :  { %v666_v32 = vmul.f32 %v634_v28, %v1013_v44  ;;  %v667_v33 = vmul.f32 %v635_v52, %v1015_v45  ;;  %v664_v26 = vmul.f32 %v632_v61, %v1001_v38 }
 0x30f   :  { %v665_v27 = vmul.f32 %v633_v56, %v1003_v39  ;;  %v595_v34 = vpop.permute.xlu1 %594  ;;  %v591_v43 = vpop.permute.xlu0 %590 }
 0x310   :  { %698 = vst [vmem:[#allocation5 + $0x70] sm:$0xff] %v666_v32  ;;  %699 = vst [vmem:[#allocation5 + $0x78] sm:$0xff] %v667_v33  ;;  %v638_v30 = vadd.f32 %v1128_v55, %v595_v34  ;;  %v639_v53 = vadd.f32 %v829_v11, %v595_v34  ;;  %v636_v62 = vadd.f32 %v1128_v55, %v591_v43 }
 0x311   :  { %696 = vst [vmem:[#allocation5 + $0x60] sm:$0xff] %v664_v26  ;;  %697 = vst [vmem:[#allocation5 + $0x68] sm:$0xff] %v665_v27  ;;  %v637_v50 = vadd.f32 %v829_v11, %v591_v43 }
 0x312   :  { %v670_v44 = vmul.f32 %v638_v30, %v935_v5  ;;  %v671_v45 = vmul.f32 %v639_v53, %v937_v6  ;;  %v668_v38 = vmul.f32 %v636_v62, %v925_v0 }
 0x313   :  { %v669_v39 = vmul.f32 %v637_v50, %v927_v1  ;;  %v603_v31 = vpop.permute.xlu1 %602  ;;  %v599_v37 = vpop.permute.xlu0 %598 }
 0x314   :  { %702 = vst [vmem:[#allocation5 + $0x90] sm:$0xff] %v670_v44  ;;  %703 = vst [vmem:[#allocation5 + $0x98] sm:$0xff] %v671_v45  ;;  %v642_v25 = vadd.f32 %v1128_v55, %v603_v31  ;;  %v643_v10 = vadd.f32 %v829_v11, %v603_v31  ;;  %v640_v36 = vadd.f32 %v1128_v55, %v599_v37 }
 0x315   :  { %700 = vst [vmem:[#allocation5 + $0x80] sm:$0xff] %v668_v38  ;;  %701 = vst [vmem:[#allocation5 + $0x88] sm:$0xff] %v669_v39  ;;  %v641_v60 = vadd.f32 %v829_v11, %v599_v37 }
 0x316   :  { %v674_v5 = vmul.f32 %v642_v25, %v961_v18  ;;  %v675_v6 = vmul.f32 %v643_v10, %v963_v19  ;;  %v672_v0 = vmul.f32 %v640_v36, %v949_v12 }
 0x317   :  { %v673_v1 = vmul.f32 %v641_v60, %v951_v13  ;;  %v611_v3 = vpop.permute.xlu1 %610  ;;  %v607_v17 = vpop.permute.xlu0 %606 }
 0x318   :  { %706 = vst [vmem:[#allocation5 + $0xb0] sm:$0xff] %v674_v5  ;;  %707 = vst [vmem:[#allocation5 + $0xb8] sm:$0xff] %v675_v6  ;;  %v646_v41 = vadd.f32 %v1128_v55, %v611_v3  ;;  %v647_v46 = vadd.f32 %v829_v11, %v611_v3  ;;  %v644_v47 = vadd.f32 %v1128_v55, %v607_v17 }
 0x319   :  { %704 = vst [vmem:[#allocation5 + $0xa0] sm:$0xff] %v672_v0  ;;  %705 = vst [vmem:[#allocation5 + $0xa8] sm:$0xff] %v673_v1  ;;  %v645_v59 = vadd.f32 %v829_v11, %v607_v17 }
 0x31a   :  { %v678_v18 = vmul.f32 %v646_v41, %v1200_v40  ;;  %v679_v19 = vmul.f32 %v647_v46, %v1201_v42  ;;  %v676_v12 = vmul.f32 %v644_v47, %v973_v24 }
 0x31b   :  { %v677_v13 = vmul.f32 %v645_v59, %v1199_v57  ;;  %v619_v16 = vpop.permute.xlu1 %618  ;;  %v615_v8 = vpop.permute.xlu0 %614 }
 0x31c   :  { %710 = vst [vmem:[#allocation5 + $0xd0] sm:$0xff] %v678_v18  ;;  %711 = vst [vmem:[#allocation5 + $0xd8] sm:$0xff] %v679_v19  ;;  %v650_v9 = vadd.f32 %v1128_v55, %v619_v16  ;;  %v651_v2 = vadd.f32 %v829_v11, %v619_v16  ;;  %v648_v4 = vadd.f32 %v1128_v55, %v615_v8 }
 0x31d   :  { %708 = vst [vmem:[#allocation5 + $0xc0] sm:$0xff] %v676_v12  ;;  %709 = vst [vmem:[#allocation5 + $0xc8] sm:$0xff] %v677_v13  ;;  %v649_v40 = vadd.f32 %v829_v11, %v615_v8 }
 0x31e   :  { %v682_v42 = vmul.f32 %v650_v9, %v1204_v63  ;;  %v683_v24 = vmul.f32 %v651_v2, %v1205_v58  ;;  %v680_v57 = vmul.f32 %v648_v4, %v1202_v7 }
 0x31f   :  { %v681_v22 = vmul.f32 %v649_v40, %v1203_v35 }
 0x320   :  { %714 = vst [vmem:[#allocation5 + $0xf0] sm:$0xff] %v682_v42  ;;  %715 = vst [vmem:[#allocation5 + $0xf8] sm:$0xff] %v683_v24 }
 0x321   :  { %712 = vst [vmem:[#allocation5 + $0xe0] sm:$0xff] %v680_v57  ;;  %713 = vst [vmem:[#allocation5 + $0xe8] sm:$0xff] %v681_v22 }
 0x322   :  { %863 = shalt.err (!%p860_p12)
}
 0x323   :  { %s864_s5 = scalar_lea.hbm %s1177_s4, 4096 }
 0x324   :  { %p865_p13 = scmp.ne.s32.totalorder %s1177_s4, %s864_s5  ;;  %p868_p0 = scmp.lt.u32.totalorder %s864_s5, %s1177_s4 }
 0x326   :  { %p870_p1 = pnand %p868_p0, %p865_p13 }
 0x328   :  { %873 = shalt.err (!%p870_p1)
}
 0x329   :  { %727 = dma.vmem_to_hbm [thread:$0]  %s722_s3, 4096, %s1177_s4, [#allocation4], %s879_s25, %s879_s25, %s880_s26  }
 0x32a   :  { %876 = dma.done.wait [#allocation4], 4096  }
 0x32b   :  { %877 = vsyncadd [#allocation4], 4294963200 }
 0x32c   :  { %731 = vsyncpa [#allocation3], 1 }
 0x32d   :  { %732 = vsyncpa [#allocation4], 1 }

</bundles_post_ra>
